<compile_context>
chip_gen: v6e
topology: v6e:2x2x1
jax: 0.10.0
libtpu: 0.0.40
codegen_flags: <defaults>
</compile_context>

<pallas_src>
import functools

import jax
import jax.numpy as jnp
from jax.experimental import pallas as pl
from jax.experimental.pallas import tpu as pltpu

LANE = 128  # TPU lane width; head outputs are packed lane-dense to this width


def _round_up(x, m):
    return ((x + m - 1) // m) * m


# ----------------------------------------------------------------------------
# Encoder stand-in kernel:   out = tanh(emb @ W + b) * mask
# Row-tiled over the flattened token dim; W/b stay VMEM-resident across grid.
# Emits f32 (returned to caller) and bf16 (head-kernel feed) in one pass.
# TODO(synk): the full pretrained BERT encoder stack cannot be loaded
# in-script; a single dense encoder layer stands in for it.
# ----------------------------------------------------------------------------
def encoder_kernel(emb_ref, mask_ref, w_ref, b_ref, out_f32_ref, out_bf16_ref):
    # bf16 operands, f32 accumulation on the MXU; elementwise path stays f32
    h = jnp.dot(emb_ref[...], w_ref[...], preferred_element_type=jnp.float32)
    h = jnp.tanh(h + b_ref[...]) * mask_ref[...]
    out_f32_ref[...] = h
    out_bf16_ref[...] = h.astype(jnp.bfloat16)


def encoder_forward(emb_bf16, mask_f32, w_bf16, b_f32, *, tm=512):
    M, H = emb_bf16.shape
    # Biggest row tile that keeps double-buffered in(bf16)+out(f32+bf16)
    # comfortably inside v7x's 64 MiB VMEM at production H; sublane multiple
    # of 16 for bf16 packing.
    tm_eff = min(tm, _round_up(M, 16))
    Mp = _round_up(M, tm_eff)
    if Mp != M:
        emb_bf16 = jnp.pad(emb_bf16, ((0, Mp - M), (0, 0)))
        mask_f32 = jnp.pad(mask_f32, ((0, Mp - M), (0, 0)))
    grid = (Mp // tm_eff,)
    out_f32, out_bf16 = pl.pallas_call(
        encoder_kernel,
        grid=grid,
        in_specs=[
            pl.BlockSpec((tm_eff, H), lambda i: (i, 0)),
            pl.BlockSpec((tm_eff, 1), lambda i: (i, 0)),
            pl.BlockSpec((H, H), lambda i: (0, 0)),   # resident weight
            pl.BlockSpec((1, H), lambda i: (0, 0)),   # resident bias
        ],
        out_specs=(
            pl.BlockSpec((tm_eff, H), lambda i: (i, 0)),
            pl.BlockSpec((tm_eff, H), lambda i: (i, 0)),
        ),
        out_shape=(
            jax.ShapeDtypeStruct((Mp, H), jnp.float32),
            jax.ShapeDtypeStruct((Mp, H), jnp.bfloat16),
        ),
        compiler_params=pltpu.CompilerParams(
            dimension_semantics=("parallel",)),
        cost_estimate=pl.CostEstimate(
            flops=2 * Mp * H * H,
            transcendentals=Mp * H,
            bytes_accessed=(Mp * H * 2 + Mp * 4 + H * H * 2 + H * 4
                            + Mp * H * 4 + Mp * H * 2),
        ),
    )(emb_bf16, mask_f32, w_bf16, b_f32)
    return out_f32[:M], out_bf16[:M]


# ----------------------------------------------------------------------------
# Fused head kernel: DMA row gather + trigger FFN + type FFN + L2 cost matrix.
# Gathered rows (per grid block of TG rows):
#   rows 0..N-1          -> span rows: (seq[start] + seq[end]) / 2 (trig feat)
#   rows N..N+B-1        -> cls rows:  start == end == b*S, average = identity
# One fused MXU pass:  rhs col 0 = w_trig, cols 1..C = labels^T, col C+1 = w1.
# slab rows < N : lane 0 = p_wi, lanes 1..C = L2 cost matrix, rest 0
# slab rows >= N: lanes 0..C-1 = p_tj, rest 0
# ----------------------------------------------------------------------------
def head_kernel(idx_a_ref, idx_b_ref, seq_ref, rhs_ref, consts_ref,
                feat_ref, slab_ref, buf, sem, *, n_trig, C, TG):
    H = rhs_ref.shape[0]
    base = pl.program_id(0) * TG

    # --- gather 2*TG rows from the HBM-resident sequence (start-all/wait-all)
    @pl.loop(0, TG)
    def _(g):
        pltpu.make_async_copy(seq_ref.at[idx_a_ref[base + g]],
                              buf.at[0, g], sem.at[0]).start()
        pltpu.make_async_copy(seq_ref.at[idx_b_ref[base + g]],
                              buf.at[1, g], sem.at[1]).start()

    @pl.loop(0, TG)
    def _(g):
        pltpu.make_async_copy(seq_ref.at[0], buf.at[0, g], sem.at[0]).wait()
        pltpu.make_async_copy(seq_ref.at[0], buf.at[1, g], sem.at[1]).wait()

    rows_a = buf[0].reshape(TG, H).astype(jnp.float32)
    rows_b = buf[1].reshape(TG, H).astype(jnp.float32)
    feat = (rows_a + rows_b) * 0.5          # spans: average; cls rows: identity
    feat_ref[...] = feat

    # --- one fused MXU pass over all gathered rows ---------------------------
    fused = jnp.dot(feat, rhs_ref[...], preferred_element_type=jnp.float32)  # (TG,128)
    c0 = consts_ref[0:1, :]              # lane0 = b_trig, lanes1..C = ||label||^2
    c1 = consts_ref[1:2, :]              # lanes0..C-1 = label_j.w2 + b_type
    t2 = jnp.sum(feat * feat, axis=-1, keepdims=True)                        # (TG,1)

    lane = jax.lax.broadcasted_iota(jnp.int32, fused.shape, 1)
    row = jax.lax.broadcasted_iota(jnp.int32, fused.shape, 0) + base

    sig_trig = jax.nn.sigmoid(fused + c0)                        # valid at lane 0
    cost = jnp.sqrt(jnp.maximum(t2 + c0 - 2.0 * fused, 0.0))     # lanes 1..C
    trig_slab = jnp.where(lane == 0, sig_trig,
                          jnp.where(lane <= C, cost, 0.0))

    cls_col = fused[:, C + 1:C + 2]                              # e_cls . w1
    cls_slab = jnp.where(lane < C, jax.nn.sigmoid(cls_col + c1), 0.0)

    slab_ref[...] = jnp.where(row < n_trig, trig_slab, cls_slab)


def head_forward(idx_a, idx_b, seq3_bf16, rhs, consts, *, n_trig, C, tg):
    M, _, H = seq3_bf16.shape
    GR_pad = idx_a.shape[0]
    kernel = functools.partial(head_kernel, n_trig=n_trig, C=C, TG=tg)
    grid_spec = pltpu.PrefetchScalarGridSpec(
        num_scalar_prefetch=2,                       # idx_a, idx_b -> SMEM
        grid=(GR_pad // tg,),
        in_specs=[
            pl.BlockSpec(memory_space=pl.ANY),       # seq stays in HBM
            pl.BlockSpec((H, LANE), lambda i, a, b: (0, 0)),   # resident rhs
            pl.BlockSpec((2, LANE), lambda i, a, b: (0, 0)),   # resident consts
        ],
        out_specs=(
            pl.BlockSpec((tg, H), lambda i, a, b: (i, 0)),
            pl.BlockSpec((tg, LANE), lambda i, a, b: (i, 0)),
        ),
        scratch_shapes=[
            pltpu.VMEM((2, tg, 1, H), jnp.bfloat16),   # gathered rows
            pltpu.SemaphoreType.DMA((2,)),             # one sem per gather side
        ],
    )
    out_shapes = (
        jax.ShapeDtypeStruct((GR_pad, H), jnp.float32),    # gathered features
        jax.ShapeDtypeStruct((GR_pad, LANE), jnp.float32), # packed head slab
    )
    return pl.pallas_call(
        kernel,
        grid_spec=grid_spec,
        out_shape=out_shapes,
        compiler_params=pltpu.CompilerParams(
            dimension_semantics=("parallel",),
            vmem_limit_bytes=32 * 1024 * 1024,
        ),
        cost_estimate=pl.CostEstimate(
            flops=2 * GR_pad * H * LANE,
            transcendentals=2 * GR_pad * LANE,
            bytes_accessed=(2 * GR_pad * H * 2 + H * LANE * 4 + 2 * LANE * 4
                            + GR_pad * (H + LANE) * 4),
        ),
    )(idx_a, idx_b, seq3_bf16, rhs, consts)


# ----------------------------------------------------------------------------
# BertED forward (Pallas version)
# ----------------------------------------------------------------------------
def bert_ed_forward(params, x_tokens, masks, span, aug=None):
    B, S = x_tokens.shape
    H = params["emb_table"].shape[-1]
    C = params["label_embeddings"].shape[0]
    N_SPAN = span.shape[1]
    n_trig = B * N_SPAN
    assert C + 2 <= LANE, "class_num + fused w_trig/w1 columns must fit 128 lanes"

    # ---- backbone stand-in (embedding lookup is XLA glue, dense layer Pallas)
    emb = jnp.take(params["emb_table"], x_tokens, axis=0)            # (B, S, H)
    emb_flat = emb.reshape(-1, H).astype(jnp.bfloat16)               # bf16 MXU feed
    mask_flat = masks.reshape(-1, 1).astype(jnp.float32)
    seq_f32, seq_bf16 = encoder_forward(
        emb_flat, mask_flat, params["w_enc"].astype(jnp.bfloat16),
        params["b_enc"])                                             # (B*S, H)

    return_dict = {}
    context_feature = seq_f32                                        # x.view(-1, H)
    e_cls = seq_f32.reshape(B, S, H)[:, 0, :]                        # (B, H)
    return_dict["reps"] = e_cls

    # ---- flattened row indices: span starts / ends, then cls rows ----------
    offs = (jnp.arange(B, dtype=jnp.int32) * S)[:, None]
    cls_rows = jnp.arange(B, dtype=jnp.int32) * S
    idx_a = jnp.concatenate(
        [(span[..., 0].astype(jnp.int32) + offs).reshape(-1), cls_rows])
    idx_b = jnp.concatenate(
        [(span[..., 1].astype(jnp.int32) + offs).reshape(-1), cls_rows])
    GR = n_trig + B
    tg = min(128, _round_up(GR, 8))
    GR_pad = _round_up(GR, tg)
    if GR_pad != GR:
        idx_a = jnp.pad(idx_a, (0, GR_pad - GR))   # padded rows gather row 0
        idx_b = jnp.pad(idx_b, (0, GR_pad - GR))

    # ---- parameter-derived constants packed lane-dense (cheap, done once) ---
    labels = params["label_embeddings"].astype(jnp.float32)          # (C, H)
    w_trig, b_trig = params["w_trig"], params["b_trig"]
    w_type, b_type = params["w_type"], params["b_type"]
    w1, w2 = w_type[:H, :], w_type[H:, :]
    rhs = jnp.zeros((H, LANE), jnp.float32)
    rhs = rhs.at[:, 0].set(w_trig[:, 0])
    rhs = rhs.at[:, 1:1 + C].set(labels.T)
    rhs = rhs.at[:, C + 1].set(w1[:, 0])                             # fused type FFN
    l2 = jnp.sum(labels * labels, axis=-1)                           # (C,)
    lab_row = (labels @ w2)[:, 0]                                    # (C,)
    consts = jnp.zeros((2, LANE), jnp.float32)
    consts = consts.at[0, 0].set(b_trig[0, 0]).at[0, 1:1 + C].set(l2)
    consts = consts.at[1, :C].set(lab_row + b_type[0, 0])

    # ---- fused gather + head kernel (seq stays in HBM, bf16) ---------------
    seq3 = seq_bf16.reshape(B * S, 1, H)
    feat, slab = head_forward(idx_a, idx_b, seq3, rhs, consts,
                              n_trig=n_trig, C=C, tg=tg)

    trig_feature = feat[:n_trig]                                     # (N, H)
    p_wi = slab[:n_trig, 0:1]                                        # (N, 1)
    cost_matrix = slab[:n_trig, 1:1 + C]                             # (N, C)
    p_tj = slab[n_trig:n_trig + B, :C][..., None]                    # (B, C, 1)
    # softmax over a trailing size-1 axis is identically 1.0 (reference quirk)
    D_W_P = jnp.ones_like(p_wi)
    D_T_P = jnp.ones_like(p_tj)

    return_dict["context_feat"] = context_feature
    return_dict["trig_feat"] = trig_feature
    return_dict["p_wi"] = p_wi
    return_dict["D_W_P"] = D_W_P
    return_dict["p_tj"] = p_tj
    return_dict["D_T_P"] = D_T_P
    return_dict["cost_matrix"] = cost_matrix

    # TODO(synk): `aug` branch in the reference calls self.fc, which is never
    # defined in __init__; omitted rather than faked.
    return return_dict


def init_params(key, vocab=50, hidden=32, class_num=5):
    ks = jax.random.split(key, 8)
    return {
        "emb_table": jax.random.normal(ks[0], (vocab, hidden), jnp.float32) * 0.02,
        "w_enc": jax.random.normal(ks[1], (hidden, hidden), jnp.float32) * 0.05,
        "b_enc": jnp.zeros((1, hidden), jnp.float32),
        # torch.rand -> uniform [0, 1)
        "label_embeddings": jax.random.uniform(ks[2], (class_num, hidden), jnp.float32),
        "w_trig": jax.random.normal(ks[3], (hidden, 1), jnp.float32) * 0.1,
        "b_trig": jnp.zeros((1, 1), jnp.float32),
        "w_type": jax.random.normal(ks[4], (2 * hidden, 1), jnp.float32) * 0.1,
        "b_type": jnp.zeros((1, 1), jnp.float32),
    }


if __name__ == "__main__":
    B, S, H, C, V, N_SPAN = 2, 8, 32, 5, 50, 3
    key = jax.random.PRNGKey(0)
    k_par, k_tok, k_span = jax.random.split(key, 3)

    params = init_params(k_par, vocab=V, hidden=H, class_num=C)

    x_tokens = jax.random.randint(k_tok, (B, S), 0, V, dtype=jnp.int32)
    masks = jnp.ones((B, S), jnp.float32).at[:, S - 2:].set(0.0)   # a little padding
    span = jax.random.randint(k_span, (B, N_SPAN, 2), 1, S, dtype=jnp.int32)

    out = bert_ed_forward(params, x_tokens, masks, span)
    jax.block_until_ready(out)

    assert out["reps"].shape == (B, H)
    assert out["context_feat"].shape == (B * S, H)
    assert out["trig_feat"].shape == (B * N_SPAN, H)
    assert out["p_wi"].shape == (B * N_SPAN, 1)
    assert out["D_W_P"].shape == (B * N_SPAN, 1)
    assert out["p_tj"].shape == (B, C, 1)
    assert out["D_T_P"].shape == (B, C, 1)
    assert out["cost_matrix"].shape == (B * N_SPAN, C)

    print("KERNEL_OK")
</pallas_src>

<mosaic_0001>
module attributes {stable_mosaic.version = 11 : i64} {
  func.func @encoder_kernel(%arg0: i32, %arg1: memref<16x32xbf16, #tpu.memory_space<vmem>>, %arg2: memref<16x1xf32, #tpu.memory_space<vmem>>, %arg3: memref<32x32xbf16, #tpu.memory_space<vmem>>, %arg4: memref<1x32xf32, #tpu.memory_space<vmem>>, %arg5: memref<16x32xf32, #tpu.memory_space<vmem>>, %arg6: memref<16x32xbf16, #tpu.memory_space<vmem>>) attributes {dimension_semantics = [#tpu.dimension_semantics<parallel>], iteration_bounds = array<i64: 1>, scalar_prefetch = 0 : i64, scratch_operands = 0 : i64, tpu.core_type = #tpu.core_type<tc>, window_params = [{transform_indices = @transform_0, window_bounds = array<i64: 16, 32>}, {transform_indices = @transform_1, window_bounds = array<i64: 16, 1>}, {pipeline_mode = #tpu.pipeline_mode<synchronous>, transform_indices = @transform_2, window_bounds = array<i64: 32, 32>}, {pipeline_mode = #tpu.pipeline_mode<synchronous>, transform_indices = @transform_3, window_bounds = array<i64: 1, 32>}, {transform_indices = @transform_4, window_bounds = array<i64: 16, 32>}, {transform_indices = @transform_5, window_bounds = array<i64: 16, 32>}]} {
    %c0 = arith.constant 0 : index
    %c0_0 = arith.constant 0 : index
    %0 = vector.load %arg1[%c0, %c0_0] : memref<16x32xbf16, #tpu.memory_space<vmem>>, vector<16x32xbf16>
    %c0_1 = arith.constant 0 : index
    %c0_2 = arith.constant 0 : index
    %1 = vector.load %arg3[%c0_1, %c0_2] : memref<32x32xbf16, #tpu.memory_space<vmem>>, vector<32x32xbf16>
    %cst = arith.constant dense<0.000000e+00> : vector<16x32xf32>
    %2 = tpu.matmul %0, %1, %cst {dimension_numbers = #tpu.dot_dimension_numbers<[1], [0], [0], [1], [0, 0, 1, 1], [], []>} : vector<16x32xbf16>, vector<32x32xbf16>, vector<16x32xf32> -> vector<16x32xf32>
    %c0_3 = arith.constant 0 : index
    %c0_4 = arith.constant 0 : index
    %3 = vector.load %arg4[%c0_3, %c0_4] : memref<1x32xf32, #tpu.memory_space<vmem>>, vector<1x32xf32>
    %4 = vector.broadcast %3 : vector<1x32xf32> to vector<16x32xf32>
    %5 = arith.addf %2, %4 : vector<16x32xf32>
    %6 = math.tanh %5 : vector<16x32xf32>
    %c0_5 = arith.constant 0 : index
    %c0_6 = arith.constant 0 : index
    %7 = vector.load %arg2[%c0_5, %c0_6] : memref<16x1xf32, #tpu.memory_space<vmem>>, vector<16x1xf32>
    %8 = vector.broadcast %7 : vector<16x1xf32> to vector<16x32xf32>
    %9 = arith.mulf %6, %8 : vector<16x32xf32>
    %c0_7 = arith.constant 0 : index
    %c0_8 = arith.constant 0 : index
    %10 = vector.load %arg5[%c0_7, %c0_8] : memref<16x32xf32, #tpu.memory_space<vmem>>, vector<16x32xf32>
    tpu.vector_store %arg5[%c0_7, %c0_8], %9 {strides = array<i32>} : memref<16x32xf32, #tpu.memory_space<vmem>>, vector<16x32xf32>,
    %11 = arith.truncf %9 : vector<16x32xf32> to vector<16x32xbf16>
    %c0_9 = arith.constant 0 : index
    %c0_10 = arith.constant 0 : index
    %12 = vector.load %arg6[%c0_9, %c0_10] : memref<16x32xbf16, #tpu.memory_space<vmem>>, vector<16x32xbf16>
    tpu.vector_store %arg6[%c0_9, %c0_10], %11 {strides = array<i32>} : memref<16x32xbf16, #tpu.memory_space<vmem>>, vector<16x32xbf16>,
    return
  }
  func.func @transform_0(%arg0: i32) -> (i32, i32) {
    %c0_i32 = arith.constant 0 : i32
    %c0_i32_0 = arith.constant 0 : i32
    return %arg0, %c0_i32 : i32, i32
  }
  func.func @transform_1(%arg0: i32) -> (i32, i32) {
    %c0_i32 = arith.constant 0 : i32
    %c0_i32_0 = arith.constant 0 : i32
    return %arg0, %c0_i32 : i32, i32
  }
  func.func @transform_2(%arg0: i32) -> (i32, i32) {
    %c0_i32 = arith.constant 0 : i32
    %c0_i32_0 = arith.constant 0 : i32
    %c0_i32_1 = arith.constant 0 : i32
    return %c0_i32, %c0_i32_0 : i32, i32
  }
  func.func @transform_3(%arg0: i32) -> (i32, i32) {
    %c0_i32 = arith.constant 0 : i32
    %c0_i32_0 = arith.constant 0 : i32
    %c0_i32_1 = arith.constant 0 : i32
    return %c0_i32, %c0_i32_0 : i32, i32
  }
  func.func @transform_4(%arg0: i32) -> (i32, i32) {
    %c0_i32 = arith.constant 0 : i32
    %c0_i32_0 = arith.constant 0 : i32
    return %arg0, %c0_i32 : i32, i32
  }
  func.func @transform_5(%arg0: i32) -> (i32, i32) {
    %c0_i32 = arith.constant 0 : i32
    %c0_i32_0 = arith.constant 0 : i32
    return %arg0, %c0_i32 : i32, i32
  }
}

</mosaic_0001>

<bundles_post_ra>
// kernel: tpu_custom_call.1
= control target key start
LH: loop header
LB: loop body
LE: loop exit
PB: predicated region body
PF: predicated region fallthrough
CT: control target
= control target key end

     0   :  { %11 = vsyncpa [#allocation3], 0  ;;  %s352_s0 = inlined_call_operand.hbm [shape: bf16[16,32], index: 0, kind: input, shape index: {}]   ;;  %s353_s1 = inlined_call_operand.vmem [shape: f32[16,1], index: 1, kind: input, shape index: {}]   ;;  %s354_s2 = inlined_call_operand.vmem [shape: bf16[32,32], index: 2, kind: input, shape index: {}]   ;;  %s355_s3 = inlined_call_operand.vmem [shape: f32[1,32], index: 3, kind: input, shape index: {}]   ;;  %s356_s4 = inlined_call_operand.hbm [shape: f32[16,32], index: 4, kind: output, shape index: {0}]   ;;  %s357_s5 = inlined_call_operand.hbm [shape: bf16[16,32], index: 5, kind: output, shape index: {1}]  }
   0x1   :  { %12 = vsyncpa [#allocation4], 0 }
   0x2   :  { %13 = vsyncpa [#allocation7], 0  ;;  %s277_s18 = smov [#allocation2]  }
   0x3   :  { %s19_s19 = sshll.u32 %s277_s18, 4  ;;  %s20_s19 = int_to_ptr.vmem [resolvable:$true] %s19_s19 }
   0x4   :  { %s219_s20 = scalar_lea.vmem %s20_s19, 128  ;;  %p224_p1 = scmp.lt.s32.totalorder %s20_s19, %s20_s19 }
   0x5   :  { %p220_p0 = scmp.ne.s32.totalorder %s20_s19, %s219_s20  ;;  %p225_p2 = scmp.lt.s32.totalorder %s219_s20, %s219_s20 }
   0x7   :  { %p226_p3 = por %p225_p2, %p224_p1 }
   0x9   :  { %p227_p4 = pnand %p226_p3, %p220_p0 }
   0xb   :  { %230 = shalt.err (!%p227_p4)
}
   0xc   :  { %s278_s21 = smov 64   ;;  %s279_s22 = smov 4  }
   0xd   :  { %25 = dma.hbm_to_vmem [thread:$0]  %s352_s0, 128, %s20_s19, [#allocation3], %s278_s21, %s278_s21, %s279_s22  }
   0xe   :  { %271 = dma.done.wait [#allocation3], 128  }
   0xf   :  { %272 = vsyncadd [#allocation3], 4294967168  ;;  %v280_v0 = vmov 0.0   ;;  %vm281_vm0 = vmmov 0   ;;  %v282_v1 = vmov 0   ;;  %v204_v2 = vld [vmem:[%s354_s2 + $0x8] sm:$0xff]  }
  0x10   :  { %185 = vmatprep.subr.bf16.mxu0 %v280_v0  ;;  %189 = vmatprep.mubr.msk.bf16.mxu0 %vm281_vm0, %v280_v0  ;;  %v205_v3 = vld [vmem:[%s354_s2] sm:$0xff]   ;;  %v114_v6 = vld [vmem:[%s353_s1 + $0x8] sm:$0xff]  ;;  %vm66_vm1 = vcmask 261120   ;;  %vm137_vm2 = vcmask 257024  }
  0x11   :  { %203 = vset.pattern.permute.xlu0 %v282_v1  ;;  %186 = vmatpush3.bf16.msra.mxu0 %v204_v2  ;;  %v113_v4 = vld [vmem:[%s353_s1] sm:$0xff]  ;;  %s283_s1 = smov [#allocation5]  }
  0x12   :  { %187 = vmatprep.subr.bf16.mxu0 %v280_v0  ;;  %117 = vperm.xlu0 %203, %v113_v4   ;;  %v206_v5 = vld [vmem:[#allocation2] sm:$0xff]   ;;  %s145_s2 = sshll.u32 %s283_s1, 4  ;;  %s146_s2 = int_to_ptr.vmem [resolvable:$true] %s145_s2 }
  0x13   :  { %v173_v7 = vld [vmem:[%s355_s3] ss:$0 sm:$0xff]  ;;  %s284_s3 = smov [#allocation6]   ;;  %s231_s10 = scalar_lea.vmem %s146_s2, 256 }
  0x14   :  { %s157_s9 = sshll.u32 %s284_s3, 4  ;;  %p232_p5 = scmp.ne.s32.totalorder %s146_s2, %s231_s10  ;;  %s158_s9 = int_to_ptr.vmem [resolvable:$true] %s157_s9 }
  0x15   :  { %188 = vmatpush3.bf16.msra.mxu0 %v205_v3  ;;  %p236_p6 = scmp.lt.s32.totalorder %s146_s2, %s146_s2  ;;  %p237_p7 = scmp.lt.s32.totalorder %s231_s10, %s231_s10 }
  0x16   :  { %122 = vperm.xlu0 %203, %v114_v6  }
  0x17   :  { %p238_p8 = por %p237_p7, %p236_p6 }
  0x18   :  { %190 = vmatmul.mubr.msk.bf16.vlgmr.msra.gmra.mxu0 %vm66_vm1, %v206_v5 }
  0x19   :  { %p239_p9 = pnand %p238_p8, %p232_p5 }
  0x8d   :  { %v118_v14 = vpop.permute.xlu0 %117 }
  0x91   :  { %v123_v19 = vpop.permute.xlu0 %122 }
  0xd8   :  { %v104_v8 = vpop.f32.mrf.mxu0 }
  0xd9   :  { %v105_v9 = vadd.f32 %v173_v7, %v104_v8 }
  0xda   :  { %v191_v10 = vpop.f32.mrf.mxu0 }
  0xdb   :  { %207 = vtanh.f32 %v105_v9 }
  0xdc   :  { %v107_v11 = vpop.f32.mrf.mxu0 }
  0xdd   :  { %v108_v12 = vadd.f32 %v173_v7, %v107_v11 }
  0xde   :  { %v192_v13 = vpop.f32.mrf.mxu0 }
  0xdf   :  { %209 = vtanh.f32 %v108_v12 }
  0xe8   :  { %v208_v15 = vpop.eup %207 }
  0xe9   :  { %v125_v16 = vmul.f32 %v208_v15, %v118_v14 }
  0xeb   :  { %127 = vst.msk [vmem:[#allocation5] sm:$0xff] %vm66_vm1, %v125_v16  ;;  %v180_v17 = vpack.c.bf16 %v125_v16, %v125_v16 }
  0xec   :  { %v210_v18 = vpop.eup %209 }
  0xed   :  { %v126_v20 = vmul.f32 %v210_v18, %v123_v19  ;;  %138 = vst.msk [vmem:[#allocation6] sm:$0xf] %vm137_vm2, %v180_v17 }
  0xef   :  { %128 = vst.msk [vmem:[#allocation5 + $0x8] sm:$0xff] %vm66_vm1, %v126_v20  ;;  %v181_v21 = vpack.c.bf16 %v126_v20, %v126_v20 }
  0xf0   :  { %242 = shalt.err (!%p239_p9)
}
  0xf1   :  { %s285_s11 = smov 128   ;;  %s286_s12 = smov 8   ;;  %139 = vst.msk [vmem:[#allocation6 + $0x4] sm:$0xf] %vm137_vm2, %v181_v21 }
  0xf2   :  { %151 = dma.vmem_to_hbm [thread:$0]  %s146_s2, 256, %s356_s4, [#allocation4], %s285_s11, %s285_s11, %s286_s12  }
  0xf3   :  { %s251_s15 = scalar_lea.vmem %s158_s9, 128  ;;  %p256_p11 = scmp.lt.s32.totalorder %s158_s9, %s158_s9 }
  0xf4   :  { %p252_p10 = scmp.ne.s32.totalorder %s158_s9, %s251_s15  ;;  %p257_p12 = scmp.lt.s32.totalorder %s251_s15, %s251_s15 }
  0xf6   :  { %p258_p13 = por %p257_p12, %p256_p11 }
  0xf8   :  { %p259_p0 = pnand %p258_p13, %p252_p10 }
  0xfa   :  { %262 = shalt.err (!%p259_p0)
}
  0xfb   :  { %163 = dma.vmem_to_hbm [thread:$0]  %s158_s9, 128, %s357_s5, [#allocation7], %s278_s21, %s278_s21, %s279_s22  }
  0xfc   :  { %273 = dma.done.wait [#allocation4], 256  }
  0xfd   :  { %274 = vsyncadd [#allocation4], 4294967040 }
  0xfe   :  { %275 = dma.done.wait [#allocation7], 128  }
  0xff   :  { %276 = vsyncadd [#allocation7], 4294967168 }
 0x100   :  { %170 = vsyncpa [#allocation3], 1 }
 0x101   :  { %171 = vsyncpa [#allocation4], 1 }
 0x102   :  { %172 = vsyncpa [#allocation7], 1 }

</bundles_post_ra>
